<compile_context>
chip_gen: v7x
topology: tpu7x:2x2x1
jax: 0.10.0
libtpu: 0.0.40
codegen_flags: <defaults>
</compile_context>

<pallas_src>
import functools

import jax
import jax.numpy as jnp
from jax.experimental import pallas as pl
from jax.experimental.pallas import tpu as pltpu

MXU_DTYPE = jnp.bfloat16   # MXU operand dtype (f32 also works; tol then 1e-3)
ACT_DTYPE = jnp.bfloat16   # dtype of y1 / y2 HBM intermediates (tiled path)


# ------------------------------ kernel helpers -------------------------------
def _conv3_flat(h, w_ref, L):
    """3-tap 'same' conv along each length-L segment of flattened rows.

    h: (M, Cin) f32 with M = TB*L (TB samples concatenated along rows).
    w_ref: (3, Cin, Cout) ref, tap-major (tap 0 hits row l-1, tap 1 row l,
    tap 2 row l+1).  Shifted operands are built with pltpu.roll (XLU) plus a
    per-sample boundary mask so the halo never crosses sample boundaries.
    Returns the (M, Cout) f32 MXU accumulator.
    """
    M, _ = h.shape
    pos = jax.lax.broadcasted_iota(jnp.int32, h.shape, 0) % L   # in-sample row
    h_prev = jnp.where(pos == 0, 0.0, pltpu.roll(h, shift=1, axis=0))
    h_next = jnp.where(pos == L - 1, 0.0, pltpu.roll(h, shift=M - 1, axis=0))
    acc = jnp.dot(h_prev.astype(MXU_DTYPE), w_ref[0].astype(MXU_DTYPE),
                  preferred_element_type=jnp.float32)
    acc = acc + jnp.dot(h.astype(MXU_DTYPE), w_ref[1].astype(MXU_DTYPE),
                        preferred_element_type=jnp.float32)
    acc = acc + jnp.dot(h_next.astype(MXU_DTYPE), w_ref[2].astype(MXU_DTYPE),
                        preferred_element_type=jnp.float32)
    return acc


# ------------------------------ fused fast path -------------------------------
def _fused_block_kernel(x_ref, w1_ref, w2_ref, bn_ref, o_ref, *, eps):
    # x_ref: (N, L, C) f32; w*_ref: (3, C, C); bn_ref: (4, C) = [g1,b1,g2,b2].
    # Exact training-mode BN computed in-kernel (whole batch is resident).
    # NOTE: single-pass E[x^2]-E[x]^2 in f32; fine for post-conv activations.
    N, L, C = x_ref.shape
    M = N * L
    inv_m = 1.0 / M
    x = x_ref[...].astype(jnp.float32).reshape(M, C)

    y1 = _conv3_flat(x, w1_ref, L)
    mean1 = jnp.sum(y1, axis=0, keepdims=True) * inv_m
    var1 = jnp.sum(y1 * y1, axis=0, keepdims=True) * inv_m - mean1 * mean1
    scale1 = bn_ref[0:1, :] * jax.lax.rsqrt(var1 + eps)
    shift1 = bn_ref[1:2, :] - mean1 * scale1
    h = jnp.maximum(y1 * scale1 + shift1, 0.0)

    y2 = _conv3_flat(h, w2_ref, L)
    mean2 = jnp.sum(y2, axis=0, keepdims=True) * inv_m
    var2 = jnp.sum(y2 * y2, axis=0, keepdims=True) * inv_m - mean2 * mean2
    scale2 = bn_ref[2:3, :] * jax.lax.rsqrt(var2 + eps)
    shift2 = bn_ref[3:4, :] - mean2 * scale2

    out = jnp.maximum(y2 * scale2 + shift2 + x, 0.0)
    o_ref[...] = out.reshape(N, L, C).astype(o_ref.dtype)


# ------------------------------ tiled 3-pass path -----------------------------
def _conv1_stats_kernel(x_ref, w1_ref, y1_ref, st1_ref):
    # x_ref: (TB, L, Cin); y1_ref: (TB, L, Cout) bf16; st1_ref: (2, Cout) f32.
    TB, L, Cin = x_ref.shape
    x = x_ref[...].astype(jnp.float32).reshape(TB * L, Cin)
    y = _conv3_flat(x, w1_ref, L)                       # (TB*L, Cout) f32
    y1_ref[...] = y.reshape(TB, L, -1).astype(y1_ref.dtype)
    st1_ref[0:1, :] = jnp.sum(y, axis=0, keepdims=True)         # per-tile sum
    st1_ref[1:2, :] = jnp.sum(y * y, axis=0, keepdims=True)     # per-tile sumsq


def _bn_relu_conv2_stats_kernel(y1_ref, sc1_ref, w2_ref, y2_ref, st2_ref):
    # Folded bn1 (scale/shift) + relu, then conv2; emit bn2 per-tile partials.
    TB, L, C = y1_ref.shape
    sc = sc1_ref[...]                                   # (2, C) f32
    h = y1_ref[...].astype(jnp.float32).reshape(TB * L, C)
    h = jnp.maximum(h * sc[0:1, :] + sc[1:2, :], 0.0)
    y = _conv3_flat(h, w2_ref, L)
    y2_ref[...] = y.reshape(TB, L, -1).astype(y2_ref.dtype)
    st2_ref[0:1, :] = jnp.sum(y, axis=0, keepdims=True)
    st2_ref[1:2, :] = jnp.sum(y * y, axis=0, keepdims=True)


def _bn_add_relu_kernel(y2_ref, sc2_ref, x_ref, o_ref):
    # Folded bn2 + residual add + final relu.
    TB, L, C = y2_ref.shape
    sc = sc2_ref[...]
    y = y2_ref[...].astype(jnp.float32).reshape(TB * L, C)
    x = x_ref[...].astype(jnp.float32).reshape(TB * L, C)
    out = jnp.maximum(y * sc[0:1, :] + sc[1:2, :] + x, 0.0)
    o_ref[...] = out.reshape(TB, L, C).astype(o_ref.dtype)


# --------------------------------- wrapper ------------------------------------
def _vmem_budget_bytes():
    """~75% of the detected chip's physical VMEM (v7x 64 MiB vs v5e/v6e 128 MiB)."""
    try:
        cap = int(pltpu.get_tpu_info().vmem_capacity_bytes)
    except Exception:
        cap = 64 * 1024 * 1024        # conservative (v7x-sized) fallback
    return max(32 * 1024 * 1024, (cap * 3) // 4)


def _largest_divisor_leq(n, cap):
    cap = max(1, min(int(cap), n))
    for d in range(cap, 0, -1):
        if n % d == 0:
            return d
    return 1


def _fold_bn(stats, gamma, beta, count, eps):
    """Exact training-mode BN fold from per-tile (G, 2, C) sum/sumsq partials."""
    s = jnp.sum(stats[:, 0, :], axis=0)
    ss = jnp.sum(stats[:, 1, :], axis=0)
    mean = s / count
    var = ss / count - mean * mean                      # biased variance
    scale = gamma.astype(jnp.float32) * jax.lax.rsqrt(var + eps)
    shift = beta.astype(jnp.float32) - mean * scale
    return jnp.stack([scale, shift], axis=0)            # (2, C) f32


def basic_block_forward(x_ncl, w1_t, w2_t, g1, b1, g2, b2, eps=1e-5,
                        force_tiled=False, max_tile_batch=None):
    """x_ncl: (N, Cin, L) f32.  w1_t/w2_t: PyTorch Conv1d weights (Cout, Cin, 3)."""
    N, Cin, L = x_ncl.shape
    Cout = w1_t.shape[0]
    assert w1_t.shape == (Cout, Cin, 3) and w2_t.shape == (Cout, Cout, 3)
    assert Cin == Cout, "stride>1 / downsample branch not implemented"
    assert L % 8 == 0, "L must be a multiple of 8 (sublane tiling)"
    f32 = jnp.float32

    # Channel-last activations (boundary transpose only; a full model would
    # stay in NLC layout end-to-end and skip these two XLA transposes).
    x = jnp.transpose(x_ncl, (0, 2, 1)).astype(f32)             # (N, L, C)

    # Conv weights to tap-major (3, Cin, Cout), MXU dtype.
    w1 = jnp.transpose(w1_t, (2, 1, 0)).astype(MXU_DTYPE)
    w2 = jnp.transpose(w2_t, (2, 1, 0)).astype(MXU_DTYPE)

    budget = _vmem_budget_bytes()

    # ---- small-problem fast path: one fused kernel, exact in-kernel BN ------
    fused_bytes = 64 * N * L * Cout     # rough: x, y1, h, y2 + temps in f32
    if not force_tiled and fused_bytes <= min(budget // 2, 32 * 1024 * 1024):
        bn = jnp.stack([g1, b1, g2, b2], axis=0).astype(f32)    # (4, C)
        out_nlc = pl.pallas_call(
            functools.partial(_fused_block_kernel, eps=eps),
            out_shape=jax.ShapeDtypeStruct((N, L, Cout), f32),
            grid=(1,),
            in_specs=[pl.BlockSpec((N, L, Cin), lambda i: (0, 0, 0)),
                      pl.BlockSpec((3, Cin, Cout), lambda i: (0, 0, 0)),
                      pl.BlockSpec((3, Cout, Cout), lambda i: (0, 0, 0)),
                      pl.BlockSpec((4, Cout), lambda i: (0, 0))],
            out_specs=pl.BlockSpec((N, L, Cout), lambda i: (0, 0, 0)),
            compiler_params=pltpu.CompilerParams(
                dimension_semantics=("arbitrary",),
                vmem_limit_bytes=budget),
        )(x, w1, w2, bn)
        return jnp.transpose(out_nlc, (0, 2, 1))

    # ---- tiled path: TB samples per grid step, 3 passes, exact BN -----------
    # Per-step working set ~ TB*L*C * (f32 temps + double-buffered bf16 I/O);
    # size TB against ~60% of the scoped VMEM budget. TB must divide N so the
    # BN partials only ever see real rows.
    per_elem_bytes = 48
    cap = max(1, int(0.6 * budget) // (per_elem_bytes * L * Cout))
    if max_tile_batch is not None:
        cap = min(cap, max_tile_batch)
    TB = _largest_divisor_leq(N, cap)
    G = N // TB

    cparams = pltpu.CompilerParams(
        dimension_semantics=("parallel",),        # megacore-shardable batch tiles
        vmem_limit_bytes=budget)

    act_spec = pl.BlockSpec((TB, L, Cout), lambda n: (n, 0, 0))
    x_spec = pl.BlockSpec((TB, L, Cin), lambda n: (n, 0, 0))
    st_spec = pl.BlockSpec((None, 2, Cout), lambda n: (n, 0, 0))
    sc_spec = pl.BlockSpec((2, Cout), lambda n: (0, 0))

    def w_spec(c_in):
        return pl.BlockSpec((3, c_in, Cout), lambda n: (0, 0, 0))

    # pass 1: conv1 -> y1 (bf16) + per-tile BN1 partials (f32)
    y1, st1 = pl.pallas_call(
        _conv1_stats_kernel,
        out_shape=(jax.ShapeDtypeStruct((N, L, Cout), ACT_DTYPE),
                   jax.ShapeDtypeStruct((G, 2, Cout), f32)),
        grid=(G,),
        in_specs=[x_spec, w_spec(Cin)],
        out_specs=(act_spec, st_spec),
        compiler_params=cparams,
    )(x, w1)
    sc1 = _fold_bn(st1, g1, b1, N * L, eps)     # tiny (2, C) XLA reduce

    # pass 2: bn1 + relu + conv2 -> y2 (bf16) + per-tile BN2 partials
    y2, st2 = pl.pallas_call(
        _bn_relu_conv2_stats_kernel,
        out_shape=(jax.ShapeDtypeStruct((N, L, Cout), ACT_DTYPE),
                   jax.ShapeDtypeStruct((G, 2, Cout), f32)),
        grid=(G,),
        in_specs=[act_spec, sc_spec, w_spec(Cout)],
        out_specs=(act_spec, st_spec),
        compiler_params=cparams,
    )(y1, sc1, w2)
    sc2 = _fold_bn(st2, g2, b2, N * L, eps)

    # pass 3: bn2 + residual add + relu
    out_nlc = pl.pallas_call(
        _bn_add_relu_kernel,
        out_shape=jax.ShapeDtypeStruct((N, L, Cout), f32),
        grid=(G,),
        in_specs=[act_spec, sc_spec, x_spec],
        out_specs=pl.BlockSpec((TB, L, Cout), lambda n: (n, 0, 0)),
        compiler_params=cparams,
    )(y2, sc2, x)

    return jnp.transpose(out_nlc, (0, 2, 1))    # (N, Cout, L)


# ---------------------------- pure-JAX reference ------------------------------
def _conv1d_ref(x, w_torch):
    # x: (N, C, L), w_torch: (Cout, Cin, 3) (PyTorch layout), stride=1, pad=1
    return jax.lax.conv_general_dilated(
        x, w_torch, window_strides=(1,), padding=((1, 1),),
        dimension_numbers=('NCH', 'OIH', 'NCH'))


def _bn_train_ref(x, g, b, eps=1e-5):
    mean = jnp.mean(x, axis=(0, 2), keepdims=True)
    var = jnp.mean((x - mean) ** 2, axis=(0, 2), keepdims=True)
    return (x - mean) * jax.lax.rsqrt(var + eps) * g.reshape(1, -1, 1) \
        + b.reshape(1, -1, 1)


def reference_forward(x, w1_t, w2_t, g1, b1, g2, b2):
    out = jnp.maximum(_bn_train_ref(_conv1d_ref(x, w1_t), g1, b1), 0.0)
    out = _bn_train_ref(_conv1d_ref(out, w2_t), g2, b2)
    return jnp.maximum(out + x, 0.0)


if __name__ == "__main__":
    key = jax.random.PRNGKey(0)
    N, C, L = 2, 4, 16          # batch, channels (inplanes == planes), length

    k1, k2, kx = jax.random.split(key, 3)
    # Conv weights in PyTorch layout (out, in, kernel=3), deterministic init.
    w1_torch = jax.random.normal(k1, (C, C, 3), jnp.float32) * 0.3
    w2_torch = jax.random.normal(k2, (C, C, 3), jnp.float32) * 0.3
    # BatchNorm affine params (deterministic, non-trivial).
    g1 = 1.0 + 0.10 * jnp.arange(C, dtype=jnp.float32)
    b1 = 0.05 * jnp.arange(C, dtype=jnp.float32)
    g2 = 1.0 - 0.05 * jnp.arange(C, dtype=jnp.float32)
    b2 = -0.02 * jnp.arange(C, dtype=jnp.float32)

    x = jax.random.normal(kx, (N, C, L), jnp.float32)
    ref = reference_forward(x, w1_torch, w2_torch, g1, b1, g2, b2)
    tol = 1e-3 if MXU_DTYPE == jnp.float32 else 5e-2   # bf16 MXU path

    # 1) fused small-problem fast path (taken at this size)
    out = jax.block_until_ready(
        basic_block_forward(x, w1_torch, w2_torch, g1, b1, g2, b2))
    assert out.shape == ref.shape == (N, C, L)
    err_fused = float(jnp.max(jnp.abs(out - ref)))
    assert err_fused < tol, f"fused path max abs error {err_fused}"

    # 2) tiled 3-pass path (what larger problems use), forced here with TB=1
    out_t = jax.block_until_ready(
        basic_block_forward(x, w1_torch, w2_torch, g1, b1, g2, b2,
                            force_tiled=True, max_tile_batch=1))
    err_tiled = float(jnp.max(jnp.abs(out_t - ref)))
    assert err_tiled < tol, f"tiled path max abs error {err_tiled}"

    print("KERNEL_OK")
</pallas_src>

<mosaic_0001>
module attributes {stable_mosaic.version = 11 : i64} {
  func.func @_fused_block_kernel(%arg0: i32, %arg1: memref<2x16x4xf32, #tpu.memory_space<vmem>>, %arg2: memref<3x4x4xbf16, #tpu.memory_space<vmem>>, %arg3: memref<3x4x4xbf16, #tpu.memory_space<vmem>>, %arg4: memref<4x4xf32, #tpu.memory_space<vmem>>, %arg5: memref<2x16x4xf32, #tpu.memory_space<vmem>>) attributes {dimension_semantics = [#tpu.dimension_semantics<arbitrary>], iteration_bounds = array<i64: 1>, scalar_prefetch = 0 : i64, scratch_operands = 0 : i64, tpu.core_type = #tpu.core_type<tc>, window_params = [{pipeline_mode = #tpu.pipeline_mode<synchronous>, transform_indices = @transform_0, window_bounds = array<i64: 2, 16, 4>}, {pipeline_mode = #tpu.pipeline_mode<synchronous>, transform_indices = @transform_1, window_bounds = array<i64: 3, 4, 4>}, {pipeline_mode = #tpu.pipeline_mode<synchronous>, transform_indices = @transform_2, window_bounds = array<i64: 3, 4, 4>}, {pipeline_mode = #tpu.pipeline_mode<synchronous>, transform_indices = @transform_3, window_bounds = array<i64: 4, 4>}, {pipeline_mode = #tpu.pipeline_mode<synchronous>, transform_indices = @transform_4, window_bounds = array<i64: 2, 16, 4>}]} {
    %c0 = arith.constant 0 : index
    %c0_0 = arith.constant 0 : index
    %c0_1 = arith.constant 0 : index
    %0 = vector.load %arg1[%c0, %c0_0, %c0_1] : memref<2x16x4xf32, #tpu.memory_space<vmem>>, vector<2x16x4xf32>
    %1 = vector.shape_cast %0 : vector<2x16x4xf32> to vector<32x4xf32>
    %2 = tpu.iota {dimensions = array<i32: 0>} : vector<32x4xi32>
    %c16_i32 = arith.constant 16 : i32
    %c0_i32 = arith.constant 0 : i32
    %3 = arith.cmpi eq, %c16_i32, %c0_i32 : i32
    %c1_i32 = arith.constant 1 : i32
    %4 = arith.select %3, %c1_i32, %c16_i32 : i32
    %5 = vector.broadcast %4 : i32 to vector<32x4xi32>
    %6 = arith.remsi %2, %5 : vector<32x4xi32>
    %c0_i32_2 = arith.constant 0 : i32
    %7 = vector.broadcast %c0_i32_2 : i32 to vector<32x4xi32>
    %8 = arith.cmpi ne, %6, %7 : vector<32x4xi32>
    %c0_i32_3 = arith.constant 0 : i32
    %9 = vector.broadcast %c0_i32_3 : i32 to vector<32x4xi32>
    %10 = arith.cmpi slt, %6, %9 : vector<32x4xi32>
    %c0_i32_4 = arith.constant 0 : i32
    %11 = arith.cmpi slt, %4, %c0_i32_4 : i32
    %12 = vector.broadcast %11 : i1 to vector<32x4xi1>
    %13 = vector.broadcast %12 : vector<32x4xi1> to vector<32x4xi1>
    %14 = arith.xori %10, %13 : vector<32x4xi1>
    %15 = arith.andi %14, %8 : vector<32x4xi1>
    %16 = vector.broadcast %4 : i32 to vector<32x4xi32>
    %17 = arith.addi %6, %16 : vector<32x4xi32>
    %18 = arith.select %15, %17, %6 : vector<32x4xi1>, vector<32x4xi32>
    %c0_i32_5 = arith.constant 0 : i32
    %19 = vector.broadcast %c0_i32_5 : i32 to vector<32x4xi32>
    %20 = arith.cmpi eq, %18, %19 : vector<32x4xi32>
    %c1_i32_6 = arith.constant 1 : i32
    %21 = tpu.dynamic_rotate %1 by %c1_i32_6 dim 0 : vector<32x4xf32>, i32 -> vector<32x4xf32>
    %cst = arith.constant 0.000000e+00 : f32
    %22 = vector.broadcast %cst : f32 to vector<32x4xf32>
    %23 = arith.select %20, %22, %21 : vector<32x4xi1>, vector<32x4xf32>
    %c15_i32 = arith.constant 15 : i32
    %24 = vector.broadcast %c15_i32 : i32 to vector<32x4xi32>
    %25 = arith.cmpi eq, %18, %24 : vector<32x4xi32>
    %c31_i32 = arith.constant 31 : i32
    %26 = tpu.dynamic_rotate %1 by %c31_i32 dim 0 : vector<32x4xf32>, i32 -> vector<32x4xf32>
    %cst_7 = arith.constant 0.000000e+00 : f32
    %27 = vector.broadcast %cst_7 : f32 to vector<32x4xf32>
    %28 = arith.select %25, %27, %26 : vector<32x4xi1>, vector<32x4xf32>
    %29 = arith.truncf %23 : vector<32x4xf32> to vector<32x4xbf16>
    %c0_8 = arith.constant 0 : index
    %c0_9 = arith.constant 0 : index
    %c0_10 = arith.constant 0 : index
    %30 = vector.load %arg2[%c0_8, %c0_9, %c0_10] : memref<3x4x4xbf16, #tpu.memory_space<vmem>>, vector<1x4x4xbf16>
    %31 = vector.shape_cast %30 : vector<1x4x4xbf16> to vector<4x4xbf16>
    %cst_11 = arith.constant dense<0.000000e+00> : vector<32x4xf32>
    %32 = tpu.matmul %29, %31, %cst_11 {dimension_numbers = #tpu.dot_dimension_numbers<[1], [0], [0], [1], [0, 0, 1, 1], [], []>} : vector<32x4xbf16>, vector<4x4xbf16>, vector<32x4xf32> -> vector<32x4xf32>
    %33 = arith.truncf %1 : vector<32x4xf32> to vector<32x4xbf16>
    %c1 = arith.constant 1 : index
    %c0_12 = arith.constant 0 : index
    %c0_13 = arith.constant 0 : index
    %34 = vector.load %arg2[%c1, %c0_12, %c0_13] : memref<3x4x4xbf16, #tpu.memory_space<vmem>>, vector<1x4x4xbf16>
    %35 = vector.shape_cast %34 : vector<1x4x4xbf16> to vector<4x4xbf16>
    %cst_14 = arith.constant dense<0.000000e+00> : vector<32x4xf32>
    %36 = tpu.matmul %33, %35, %cst_14 {dimension_numbers = #tpu.dot_dimension_numbers<[1], [0], [0], [1], [0, 0, 1, 1], [], []>} : vector<32x4xbf16>, vector<4x4xbf16>, vector<32x4xf32> -> vector<32x4xf32>
    %37 = arith.addf %32, %36 : vector<32x4xf32>
    %38 = arith.truncf %28 : vector<32x4xf32> to vector<32x4xbf16>
    %c2 = arith.constant 2 : index
    %c0_15 = arith.constant 0 : index
    %c0_16 = arith.constant 0 : index
    %39 = vector.load %arg2[%c2, %c0_15, %c0_16] : memref<3x4x4xbf16, #tpu.memory_space<vmem>>, vector<1x4x4xbf16>
    %40 = vector.shape_cast %39 : vector<1x4x4xbf16> to vector<4x4xbf16>
    %cst_17 = arith.constant dense<0.000000e+00> : vector<32x4xf32>
    %41 = tpu.matmul %38, %40, %cst_17 {dimension_numbers = #tpu.dot_dimension_numbers<[1], [0], [0], [1], [0, 0, 1, 1], [], []>} : vector<32x4xbf16>, vector<4x4xbf16>, vector<32x4xf32> -> vector<32x4xf32>
    %42 = arith.addf %37, %41 : vector<32x4xf32>
    %cst_18 = arith.constant dense<0.000000e+00> : vector<4xf32>
    %43 = vector.multi_reduction <add>, %42, %cst_18 [0] : vector<32x4xf32> to vector<4xf32>
    %44 = vector.shape_cast %43 : vector<4xf32> to vector<1x4xf32>
    %cst_19 = arith.constant 3.125000e-02 : f32
    %45 = vector.broadcast %cst_19 : f32 to vector<1x4xf32>
    %46 = arith.mulf %44, %45 : vector<1x4xf32>
    %47 = arith.mulf %42, %42 : vector<32x4xf32>
    %cst_20 = arith.constant dense<0.000000e+00> : vector<4xf32>
    %48 = vector.multi_reduction <add>, %47, %cst_20 [0] : vector<32x4xf32> to vector<4xf32>
    %49 = vector.shape_cast %48 : vector<4xf32> to vector<1x4xf32>
    %cst_21 = arith.constant 3.125000e-02 : f32
    %50 = vector.broadcast %cst_21 : f32 to vector<1x4xf32>
    %51 = arith.mulf %49, %50 : vector<1x4xf32>
    %52 = arith.mulf %46, %46 : vector<1x4xf32>
    %53 = arith.subf %51, %52 : vector<1x4xf32>
    %c0_22 = arith.constant 0 : index
    %c0_23 = arith.constant 0 : index
    %54 = vector.load %arg4[%c0_22, %c0_23] : memref<4x4xf32, #tpu.memory_space<vmem>>, vector<1x4xf32>
    %cst_24 = arith.constant 9.99999974E-6 : f32
    %55 = vector.broadcast %cst_24 : f32 to vector<1x4xf32>
    %56 = arith.addf %53, %55 : vector<1x4xf32>
    %57 = math.rsqrt %56 : vector<1x4xf32>
    %58 = arith.mulf %54, %57 : vector<1x4xf32>
    %c1_25 = arith.constant 1 : index
    %c0_26 = arith.constant 0 : index
    %59 = vector.load %arg4[%c1_25, %c0_26] : memref<4x4xf32, #tpu.memory_space<vmem>>, vector<1x4xf32>
    %60 = arith.mulf %46, %58 : vector<1x4xf32>
    %61 = arith.subf %59, %60 : vector<1x4xf32>
    %62 = vector.broadcast %58 : vector<1x4xf32> to vector<32x4xf32>
    %63 = arith.mulf %42, %62 : vector<32x4xf32>
    %64 = vector.broadcast %61 : vector<1x4xf32> to vector<32x4xf32>
    %65 = arith.addf %63, %64 : vector<32x4xf32>
    %cst_27 = arith.constant 0.000000e+00 : f32
    %66 = vector.broadcast %cst_27 : f32 to vector<32x4xf32>
    %67 = arith.maximumf %65, %66 : vector<32x4xf32>
    %68 = tpu.iota {dimensions = array<i32: 0>} : vector<32x4xi32>
    %c16_i32_28 = arith.constant 16 : i32
    %c0_i32_29 = arith.constant 0 : i32
    %69 = arith.cmpi eq, %c16_i32_28, %c0_i32_29 : i32
    %c1_i32_30 = arith.constant 1 : i32
    %70 = arith.select %69, %c1_i32_30, %c16_i32_28 : i32
    %71 = vector.broadcast %70 : i32 to vector<32x4xi32>
    %72 = arith.remsi %68, %71 : vector<32x4xi32>
    %c0_i32_31 = arith.constant 0 : i32
    %73 = vector.broadcast %c0_i32_31 : i32 to vector<32x4xi32>
    %74 = arith.cmpi ne, %72, %73 : vector<32x4xi32>
    %c0_i32_32 = arith.constant 0 : i32
    %75 = vector.broadcast %c0_i32_32 : i32 to vector<32x4xi32>
    %76 = arith.cmpi slt, %72, %75 : vector<32x4xi32>
    %c0_i32_33 = arith.constant 0 : i32
    %77 = arith.cmpi slt, %70, %c0_i32_33 : i32
    %78 = vector.broadcast %77 : i1 to vector<32x4xi1>
    %79 = vector.broadcast %78 : vector<32x4xi1> to vector<32x4xi1>
    %80 = arith.xori %76, %79 : vector<32x4xi1>
    %81 = arith.andi %80, %74 : vector<32x4xi1>
    %82 = vector.broadcast %70 : i32 to vector<32x4xi32>
    %83 = arith.addi %72, %82 : vector<32x4xi32>
    %84 = arith.select %81, %83, %72 : vector<32x4xi1>, vector<32x4xi32>
    %c0_i32_34 = arith.constant 0 : i32
    %85 = vector.broadcast %c0_i32_34 : i32 to vector<32x4xi32>
    %86 = arith.cmpi eq, %84, %85 : vector<32x4xi32>
    %c1_i32_35 = arith.constant 1 : i32
    %87 = tpu.dynamic_rotate %67 by %c1_i32_35 dim 0 : vector<32x4xf32>, i32 -> vector<32x4xf32>
    %cst_36 = arith.constant 0.000000e+00 : f32
    %88 = vector.broadcast %cst_36 : f32 to vector<32x4xf32>
    %89 = arith.select %86, %88, %87 : vector<32x4xi1>, vector<32x4xf32>
    %c15_i32_37 = arith.constant 15 : i32
    %90 = vector.broadcast %c15_i32_37 : i32 to vector<32x4xi32>
    %91 = arith.cmpi eq, %84, %90 : vector<32x4xi32>
    %c31_i32_38 = arith.constant 31 : i32
    %92 = tpu.dynamic_rotate %67 by %c31_i32_38 dim 0 : vector<32x4xf32>, i32 -> vector<32x4xf32>
    %cst_39 = arith.constant 0.000000e+00 : f32
    %93 = vector.broadcast %cst_39 : f32 to vector<32x4xf32>
    %94 = arith.select %91, %93, %92 : vector<32x4xi1>, vector<32x4xf32>
    %95 = arith.truncf %89 : vector<32x4xf32> to vector<32x4xbf16>
    %c0_40 = arith.constant 0 : index
    %c0_41 = arith.constant 0 : index
    %c0_42 = arith.constant 0 : index
    %96 = vector.load %arg3[%c0_40, %c0_41, %c0_42] : memref<3x4x4xbf16, #tpu.memory_space<vmem>>, vector<1x4x4xbf16>
    %97 = vector.shape_cast %96 : vector<1x4x4xbf16> to vector<4x4xbf16>
    %cst_43 = arith.constant dense<0.000000e+00> : vector<32x4xf32>
    %98 = tpu.matmul %95, %97, %cst_43 {dimension_numbers = #tpu.dot_dimension_numbers<[1], [0], [0], [1], [0, 0, 1, 1], [], []>} : vector<32x4xbf16>, vector<4x4xbf16>, vector<32x4xf32> -> vector<32x4xf32>
    %99 = arith.truncf %67 : vector<32x4xf32> to vector<32x4xbf16>
    %c1_44 = arith.constant 1 : index
    %c0_45 = arith.constant 0 : index
    %c0_46 = arith.constant 0 : index
    %100 = vector.load %arg3[%c1_44, %c0_45, %c0_46] : memref<3x4x4xbf16, #tpu.memory_space<vmem>>, vector<1x4x4xbf16>
    %101 = vector.shape_cast %100 : vector<1x4x4xbf16> to vector<4x4xbf16>
    %cst_47 = arith.constant dense<0.000000e+00> : vector<32x4xf32>
    %102 = tpu.matmul %99, %101, %cst_47 {dimension_numbers = #tpu.dot_dimension_numbers<[1], [0], [0], [1], [0, 0, 1, 1], [], []>} : vector<32x4xbf16>, vector<4x4xbf16>, vector<32x4xf32> -> vector<32x4xf32>
    %103 = arith.addf %98, %102 : vector<32x4xf32>
    %104 = arith.truncf %94 : vector<32x4xf32> to vector<32x4xbf16>
    %c2_48 = arith.constant 2 : index
    %c0_49 = arith.constant 0 : index
    %c0_50 = arith.constant 0 : index
    %105 = vector.load %arg3[%c2_48, %c0_49, %c0_50] : memref<3x4x4xbf16, #tpu.memory_space<vmem>>, vector<1x4x4xbf16>
    %106 = vector.shape_cast %105 : vector<1x4x4xbf16> to vector<4x4xbf16>
    %cst_51 = arith.constant dense<0.000000e+00> : vector<32x4xf32>
    %107 = tpu.matmul %104, %106, %cst_51 {dimension_numbers = #tpu.dot_dimension_numbers<[1], [0], [0], [1], [0, 0, 1, 1], [], []>} : vector<32x4xbf16>, vector<4x4xbf16>, vector<32x4xf32> -> vector<32x4xf32>
    %108 = arith.addf %103, %107 : vector<32x4xf32>
    %cst_52 = arith.constant dense<0.000000e+00> : vector<4xf32>
    %109 = vector.multi_reduction <add>, %108, %cst_52 [0] : vector<32x4xf32> to vector<4xf32>
    %110 = vector.shape_cast %109 : vector<4xf32> to vector<1x4xf32>
    %cst_53 = arith.constant 3.125000e-02 : f32
    %111 = vector.broadcast %cst_53 : f32 to vector<1x4xf32>
    %112 = arith.mulf %110, %111 : vector<1x4xf32>
    %113 = arith.mulf %108, %108 : vector<32x4xf32>
    %cst_54 = arith.constant dense<0.000000e+00> : vector<4xf32>
    %114 = vector.multi_reduction <add>, %113, %cst_54 [0] : vector<32x4xf32> to vector<4xf32>
    %115 = vector.shape_cast %114 : vector<4xf32> to vector<1x4xf32>
    %cst_55 = arith.constant 3.125000e-02 : f32
    %116 = vector.broadcast %cst_55 : f32 to vector<1x4xf32>
    %117 = arith.mulf %115, %116 : vector<1x4xf32>
    %118 = arith.mulf %112, %112 : vector<1x4xf32>
    %119 = arith.subf %117, %118 : vector<1x4xf32>
    %c2_56 = arith.constant 2 : index
    %c0_57 = arith.constant 0 : index
    %120 = vector.load %arg4[%c2_56, %c0_57] : memref<4x4xf32, #tpu.memory_space<vmem>>, vector<1x4xf32>
    %cst_58 = arith.constant 9.99999974E-6 : f32
    %121 = vector.broadcast %cst_58 : f32 to vector<1x4xf32>
    %122 = arith.addf %119, %121 : vector<1x4xf32>
    %123 = math.rsqrt %122 : vector<1x4xf32>
    %124 = arith.mulf %120, %123 : vector<1x4xf32>
    %c3 = arith.constant 3 : index
    %c0_59 = arith.constant 0 : index
    %125 = vector.load %arg4[%c3, %c0_59] : memref<4x4xf32, #tpu.memory_space<vmem>>, vector<1x4xf32>
    %126 = arith.mulf %112, %124 : vector<1x4xf32>
    %127 = arith.subf %125, %126 : vector<1x4xf32>
    %128 = vector.broadcast %124 : vector<1x4xf32> to vector<32x4xf32>
    %129 = arith.mulf %108, %128 : vector<32x4xf32>
    %130 = vector.broadcast %127 : vector<1x4xf32> to vector<32x4xf32>
    %131 = arith.addf %129, %130 : vector<32x4xf32>
    %132 = arith.addf %131, %1 : vector<32x4xf32>
    %cst_60 = arith.constant 0.000000e+00 : f32
    %133 = vector.broadcast %cst_60 : f32 to vector<32x4xf32>
    %134 = arith.maximumf %132, %133 : vector<32x4xf32>
    %135 = vector.shape_cast %134 : vector<32x4xf32> to vector<2x16x4xf32>
    %c0_61 = arith.constant 0 : index
    %c0_62 = arith.constant 0 : index
    %c0_63 = arith.constant 0 : index
    %136 = vector.load %arg5[%c0_61, %c0_62, %c0_63] : memref<2x16x4xf32, #tpu.memory_space<vmem>>, vector<2x16x4xf32>
    tpu.vector_store %arg5[%c0_61, %c0_62, %c0_63], %135 {strides = array<i32>} : memref<2x16x4xf32, #tpu.memory_space<vmem>>, vector<2x16x4xf32>,
    return
  }
  func.func @transform_0(%arg0: i32) -> (i32, i32, i32) {
    %c0_i32 = arith.constant 0 : i32
    %c0_i32_0 = arith.constant 0 : i32
    %c0_i32_1 = arith.constant 0 : i32
    %c0_i32_2 = arith.constant 0 : i32
    return %c0_i32, %c0_i32_0, %c0_i32_1 : i32, i32, i32
  }
  func.func @transform_1(%arg0: i32) -> (i32, i32, i32) {
    %c0_i32 = arith.constant 0 : i32
    %c0_i32_0 = arith.constant 0 : i32
    %c0_i32_1 = arith.constant 0 : i32
    %c0_i32_2 = arith.constant 0 : i32
    return %c0_i32, %c0_i32_0, %c0_i32_1 : i32, i32, i32
  }
  func.func @transform_2(%arg0: i32) -> (i32, i32, i32) {
    %c0_i32 = arith.constant 0 : i32
    %c0_i32_0 = arith.constant 0 : i32
    %c0_i32_1 = arith.constant 0 : i32
    %c0_i32_2 = arith.constant 0 : i32
    return %c0_i32, %c0_i32_0, %c0_i32_1 : i32, i32, i32
  }
  func.func @transform_3(%arg0: i32) -> (i32, i32) {
    %c0_i32 = arith.constant 0 : i32
    %c0_i32_0 = arith.constant 0 : i32
    %c0_i32_1 = arith.constant 0 : i32
    return %c0_i32, %c0_i32_0 : i32, i32
  }
  func.func @transform_4(%arg0: i32) -> (i32, i32, i32) {
    %c0_i32 = arith.constant 0 : i32
    %c0_i32_0 = arith.constant 0 : i32
    %c0_i32_1 = arith.constant 0 : i32
    %c0_i32_2 = arith.constant 0 : i32
    return %c0_i32, %c0_i32_0, %c0_i32_1 : i32, i32, i32
  }
}

</mosaic_0001>

<bundles_post_ra>
// kernel: tpu_custom_call.1
= control target key start
LH: loop header
LB: loop body
LE: loop exit
PB: predicated region body
PF: predicated region fallthrough
CT: control target
= control target key end

     0   :  { %vm123_vm0 = vcmask 1041408   ;;  %v22_v0 = vlaneseq  ;;  %vm116_vm1 = vcmask 31744   ;;  %s973_s1 = inlined_call_operand.vmem [shape: bf16[3,4,4], index: 1, kind: input, shape index: {}]   ;;  %s974_s0 = inlined_call_operand.vmem [shape: f32[2,16,4], index: 0, kind: input, shape index: {}]   ;;  %s975_s2 = inlined_call_operand.vmem [shape: bf16[3,4,4], index: 2, kind: input, shape index: {}]   ;;  %s976_s3 = inlined_call_operand.vmem [shape: f32[4,4], index: 3, kind: input, shape index: {}]   ;;  %s977_s4 = inlined_call_operand.vmem [shape: f32[2,16,4], index: 4, kind: output, shape index: {}]  }
   0x1   :  { %v647_v1 = vld [vmem:[%s973_s1 + $0x2] sm:$0x3]  ;;  %v779_v3 = vld [vmem:[%s974_s0 + $0x8] sm:$0xff]  ;;  %v786_v5 = vld [vmem:[%s974_s0 + $0x10] sm:$0xff] }
   0x2   :  { %v774_v2 = vld [vmem:[%s974_s0] sm:$0xff]  ;;  %733 = vmatprep.subr.msk.bf16.mxu0 %vm123_vm0, %v647_v1  ;;  %v125_v4 = vsel %vm123_vm0, %v647_v1, 0  ;;  %v791_v6 = vld [vmem:[%s974_s0 + $0x18] sm:$0xff]  ;;  %v80_v8 = vrot.slane %v779_v3, 7  ;;  %v81_v10 = vrot.slane %v786_v5, 7  ;;  %v805_v14 = vshrl.u32 %v22_v0, 7 }
   0x3   :  { %682 = vmatpush3.bf16.msra.mxu0 %v125_v4  ;;  %v79_v7 = vrot.slane %v774_v2, 7  ;;  %v112_v9 = vpack.c.bf16 %v779_v3, %v774_v2  ;;  %v111_v11 = vld [vmem:[%s973_s1] sm:$0x3]  ;;  %v113_v12 = vpack.c.bf16 %v791_v6, %v786_v5  ;;  %v82_v15 = vrot.slane %v791_v6, 7  ;;  %v652_v17 = vld [vmem:[%s973_s1 + $0x4] sm:$0x3] }
   0x4   :  { %734 = vmatprep.subr.msk.bf16.mxu0 %vm123_vm0, %v111_v11  ;;  %v183_v13 = vsel %vm123_vm0, %v111_v11, 0  ;;  %v97_v16 = vrot.slane %v779_v3, 1  ;;  %v98_v18 = vrot.slane %v786_v5, 1  ;;  %v31_v19 = vand.u32 15, %v805_v14  ;;  %v655_v49 = vld [vmem:[%s975_s2 + $0x2] sm:$0x3] }
   0x5   :  { %683 = vmatprep.mubr.msk.bf16.mxu0 %vm116_vm1, %v112_v9  ;;  %vm83_vm2 = vcmp.lt.s32.totalorder %v805_v14, 1  ;;  %v25_v20 = vadd.s32 16, %v805_v14  ;;  %v24_v21 = vadd.s32 8, %v805_v14  ;;  %v96_v22 = vrot.slane %v774_v2, 1  ;;  %736 = vmatprep.subr.msk.bf16.mxu1 %vm123_vm0, %v655_v49  ;;  %v877_v51 = vld [vmem:[%s975_s2] sm:$0x3] }
   0x6   :  { %684 = vmatmul.mubr.msk.bf16.vlgmr.msra.gmra.mrb[0].mxu0 %vm116_vm1, %v113_v12  ;;  %v86_v23 = vsel %vm83_vm2, %v79_v7, %v80_v8  ;;  %v87_v24 = vsel %vm83_vm2, %v82_v15, %v79_v7  ;;  %v85_v25 = vsel %vm83_vm2, %v80_v8, %v81_v10  ;;  %vm826_vm3 = vcmp.eq.s32.totalorder %v31_v19, 0 }
   0x7   :  { %688 = vmatpush3.bf16.msra.mxu0 %v183_v13  ;;  %v45_v27 = vand.u32 15, %v25_v20  ;;  %v38_v28 = vand.u32 15, %v24_v21  ;;  %vm100_vm4 = vcmp.lt.s32.totalorder %v805_v14, 7  ;;  %v88_v29 = vsel %vm826_vm3, 0.0, %v87_v24 }
   0x8   :  { %735 = vmatprep.subr.msk.bf16.mxu0 %vm123_vm0, %v652_v17  ;;  %v102_v30 = vsel %vm100_vm4, %v97_v16, %v98_v18  ;;  %v109_v31 = vpack.c.bf16 %v86_v23, %v88_v29  ;;  %v84_v34 = vsel %vm83_vm2, %v81_v10, %v82_v15  ;;  %v103_v36 = vsel %vm100_vm4, %v96_v22, %v97_v16 }
   0x9   :  { %vm836_vm5 = vcmp.eq.s32.totalorder %v45_v27, 0  ;;  %vm840_vm6 = vcmp.eq.s32.totalorder %v38_v28, 15  ;;  %v26_v38 = vadd.s32 24, %v805_v14  ;;  %v99_v41 = vrot.slane %v791_v6, 1 }
   0xa   :  { %v90_v35 = vsel %vm836_vm5, 0.0, %v85_v25  ;;  %689 = vmatprep.mubr.msk.bf16.mxu0 %vm116_vm1, %v109_v31  ;;  %v106_v37 = vsel %vm840_vm6, 0.0, %v102_v30  ;;  %v245_v42 = vsel %vm123_vm0, %v652_v17, 0  ;;  %v399_v50 = vsel %vm123_vm0, %v655_v49, 0 }
   0xb   :  { %v110_v39 = vpack.c.bf16 %v84_v34, %v90_v35  ;;  %v234_v40 = vpack.c.bf16 %v106_v37, %v103_v36  ;;  %v52_v43 = vand.u32 15, %v26_v38  ;;  %v104_v45 = vsel %vm100_vm4, %v99_v41, %v96_v22  ;;  %700 = vmatpush3.bf16.msra.mxu1 %v399_v50  ;;  %v334_v35 = vld [vmem:[%s976_s3] sm:$0x1] }
   0xc   :  { %v101_v46 = vsel %vm100_vm4, %v98_v18, %v99_v41  ;;  %737 = vmatprep.subr.msk.bf16.mxu1 %vm123_vm0, %v877_v51  ;;  %v893_v36 = vsub.s32 0, %v805_v14 }
   0xd   :  { %vm858_vm7 = vcmp.eq.s32.totalorder %v52_v43, 15 }
   0xe   :  { %v108_v47 = vsel %vm858_vm7, 0.0, %v104_v45 }
   0xf   :  { %v235_v48 = vpack.c.bf16 %v108_v47, %v101_v46 }
  0x12   :  { %690 = vmatmul.mubr.msk.bf16.vlgmr.msra.gmra.mrb[0].mxu0 %vm116_vm1, %v110_v39  ;;  %v338_v39 = vld [vmem:[%s976_s3 + $0x1] sm:$0x1] }
  0x13   :  { %694 = vmatpush3.bf16.msra.mxu0 %v245_v42  ;;  %695 = vmatprep.mubr.msk.bf16.mxu0 %vm116_vm1, %v234_v40 }
  0x1e   :  { %696 = vmatmul.mubr.msk.bf16.vlgmr.msra.gmra.mrb[0].mxu0 %vm116_vm1, %v235_v48 }
  0xf1   :  { %v697_v52 = vpop.f32.mrb[0].mxu0 }
  0xf2   :  { %v281_v53 = vpop.f32.mrb[1].mxu0  ;;  %v316_v57 = vmul.f32 %v697_v52, %v697_v52  ;;  %v303_v62 = vsel %vm116_vm1, %v697_v52, 0.0 }
  0xf3   :  { %v314_v54 = vmul.f32 %v281_v53, %v281_v53  ;;  %v698_v55 = vpop.f32.mrb[2].mxu0  ;;  %v300_v58 = vsel %vm116_vm1, %v281_v53, 0.0 }
  0xf4   :  { %v284_v56 = vpop.f32.mrb[3].mxu0  ;;  %v317_v0 = vmul.f32 %v698_v55, %v698_v55  ;;  %v321_v8 = vsel %vm116_vm1, %v316_v57, 0.0  ;;  %v305_v9 = vsel %vm116_vm1, %v698_v55, 0.0 }
  0xf5   :  { %v301_v59 = vsel %vm116_vm1, %v284_v56, 0.0  ;;  %v315_v60 = vmul.f32 %v284_v56, %v284_v56  ;;  %v318_v63 = vsel %vm116_vm1, %v314_v54, 0.0 }
  0xf6   :  { %v302_v61 = vadd.f32 %v301_v59, %v300_v58  ;;  %v323_v12 = vsel %vm116_vm1, %v317_v0, 0.0 }
  0xf7   :  { %v319_v1 = vsel %vm116_vm1, %v315_v60, 0.0 }
  0xf8   :  { %v304_v4 = vadd.f32 %v303_v62, %v302_v61  ;;  %v320_v7 = vadd.f32 %v319_v1, %v318_v63  ;;  %v457_v62 = vsel %vm123_vm0, %v877_v51, 0 }
  0xfa   :  { %v306_v10 = vadd.f32 %v305_v9, %v304_v4  ;;  %v322_v11 = vadd.f32 %v321_v8, %v320_v7 }
  0xfc   :  { %v307_v13 = vrot.slane %v306_v10, 4  ;;  %v324_v15 = vadd.f32 %v323_v12, %v322_v11  ;;  %v660_v11 = vld [vmem:[%s975_s2 + $0x4] sm:$0x3] }
  0xfd   :  { %v519_v26 = vsel %vm123_vm0, %v660_v11, 0 }
  0xfe   :  { %v308_v16 = vadd.f32 %v307_v13, %v306_v10  ;;  %v325_v17 = vrot.slane %v324_v15, 4 }
 0x100   :  { %v309_v18 = vrot.slane %v308_v16, 2  ;;  %v326_v19 = vadd.f32 %v325_v17, %v324_v15 }
 0x102   :  { %v310_v20 = vadd.f32 %v309_v18, %v308_v16  ;;  %v327_v21 = vrot.slane %v326_v19, 2 }
 0x104   :  { %v311_v22 = vrot.slane %v310_v20, 1  ;;  %v328_v23 = vadd.f32 %v327_v21, %v326_v19 }
 0x106   :  { %v312_v24 = vadd.f32 %v311_v22, %v310_v20  ;;  %v329_v25 = vrot.slane %v328_v23, 1 }
 0x108   :  { %v313_v27 = vmul.f32 0.03125, %v312_v24  ;;  %v330_v28 = vadd.f32 %v329_v25, %v328_v23 }
 0x10a   :  { %v331_v29 = vmul.f32 0.03125, %v330_v28  ;;  %v332_v30 = vmul.f32 %v313_v27, %v313_v27 }
 0x10c   :  { %v333_v31 = vsub.f32 %v331_v29, %v332_v30 }
 0x10e   :  { %v335_v34 = vadd.f32 1e-05, %v333_v31 }
 0x110   :  { %739 = vrsqrt.f32 %v335_v34 }
 0x11a   :  { %v740_v37 = vpop.eup %739 }
 0x11b   :  { %v337_v38 = vmul.f32 %v740_v37, %v334_v35 }
 0x11d   :  { %v339_v40 = vmul.f32 %v337_v38, %v313_v27  ;;  %v344_v41 = vrot.slane %v337_v38, %v893_v36 }
 0x11f   :  { %v340_v42 = vsub.f32 %v338_v39, %v339_v40  ;;  %v346_v43 = vmul.f32 %v344_v41, %v284_v56  ;;  %v345_v45 = vmul.f32 %v344_v41, %v281_v53  ;;  %v347_v46 = vmul.f32 %v697_v52, %v344_v41 }
 0x120   :  { %v348_v47 = vmul.f32 %v698_v55, %v344_v41 }
 0x121   :  { %v352_v48 = vrot.slane %v340_v42, %v893_v36 }
 0x123   :  { %v354_v49 = vadd.f32 %v352_v48, %v346_v43  ;;  %v353_v50 = vadd.f32 %v352_v48, %v345_v45  ;;  %v355_v54 = vadd.f32 %v352_v48, %v347_v46  ;;  %v356_v57 = vadd.f32 %v352_v48, %v348_v47 }
 0x125   :  { %v358_v58 = vmax.f32 %v354_v49, 0.0  ;;  %v357_v59 = vmax.f32 %v353_v50, 0.0  ;;  %v359_v60 = vmax.f32 %v355_v54, 0.0  ;;  %v360_v61 = vmax.f32 %v356_v57, 0.0 }
 0x127   :  { %v362_v63 = vrot.slane %v358_v58, 7  ;;  %v374_v0 = vrot.slane %v358_v58, 1  ;;  %v361_v1 = vrot.slane %v357_v59, 7  ;;  %v373_v56 = vrot.slane %v357_v59, 1 }
 0x128   :  { %v388_v53 = vpack.c.bf16 %v358_v58, %v357_v59  ;;  %v363_v52 = vrot.slane %v359_v60, 7  ;;  %v376_v55 = vrot.slane %v360_v61, 1  ;;  %v389_v4 = vpack.c.bf16 %v360_v61, %v359_v60 }
 0x129   :  { %v364_v7 = vrot.slane %v360_v61, 7  ;;  %v367_v8 = vsel %vm83_vm2, %v361_v1, %v362_v63  ;;  %v375_v9 = vrot.slane %v359_v60, 1  ;;  %v379_v10 = vsel %vm100_vm4, %v373_v56, %v374_v0 }
 0x12a   :  { %701 = vmatprep.mubr.msk.bf16.mxu1 %vm116_vm1, %v388_v53  ;;  %v366_v51 = vsel %vm83_vm2, %v362_v63, %v363_v52  ;;  %v380_v12 = vsel %vm100_vm4, %v376_v55, %v373_v56 }
 0x12b   :  { %702 = vmatmul.mubr.msk.bf16.vlgmr.msra.gmra.mrb[0].mxu1 %vm116_vm1, %v389_v4  ;;  %v368_v13 = vsel %vm83_vm2, %v364_v7, %v361_v1  ;;  %v365_v15 = vsel %vm83_vm2, %v363_v52, %v364_v7  ;;  %v371_v16 = vsel %vm836_vm5, 0.0, %v366_v51  ;;  %v378_v17 = vsel %vm100_vm4, %v374_v0, %v375_v9  ;;  %v608_v7 = vld [vmem:[%s976_s3 + $0x2] sm:$0x1] }
 0x12c   :  { %706 = vmatpush3.bf16.msra.mxu1 %v457_v62  ;;  %v369_v18 = vsel %vm826_vm3, 0.0, %v368_v13  ;;  %v386_v19 = vpack.c.bf16 %v365_v15, %v371_v16  ;;  %v382_v20 = vsel %vm840_vm6, 0.0, %v378_v17  ;;  %v377_v21 = vsel %vm100_vm4, %v375_v9, %v376_v55 }
 0x12d   :  { %v385_v22 = vpack.c.bf16 %v367_v8, %v369_v18  ;;  %738 = vmatprep.subr.msk.bf16.mxu1 %vm123_vm0, %v660_v11  ;;  %v508_v23 = vpack.c.bf16 %v382_v20, %v379_v10  ;;  %v384_v32 = vsel %vm858_vm7, 0.0, %v380_v12  ;;  %v612_v10 = vld [vmem:[%s976_s3 + $0x3] sm:$0x1] }
 0x12e   :  { %v509_v24 = vpack.c.bf16 %v384_v32, %v377_v21 }
 0x12f   :  { %707 = vmatprep.mubr.msk.bf16.mxu1 %vm116_vm1, %v385_v22 }
 0x137   :  { %708 = vmatmul.mubr.msk.bf16.vlgmr.msra.gmra.mrb[0].mxu1 %vm116_vm1, %v386_v19 }
 0x138   :  { %712 = vmatpush3.bf16.msra.mxu1 %v519_v26  ;;  %713 = vmatprep.mubr.msk.bf16.mxu1 %vm116_vm1, %v508_v23 }
 0x143   :  { %714 = vmatmul.mubr.msk.bf16.vlgmr.msra.gmra.mrb[0].mxu1 %vm116_vm1, %v509_v24 }
 0x216   :  { %v715_v14 = vpop.f32.mrb[0].mxu1 }
 0x217   :  { %v555_v33 = vpop.f32.mrb[1].mxu1  ;;  %v590_v29 = vmul.f32 %v715_v14, %v715_v14  ;;  %v577_v35 = vsel %vm116_vm1, %v715_v14, 0.0 }
 0x218   :  { %v588_v25 = vmul.f32 %v555_v33, %v555_v33  ;;  %v716_v27 = vpop.f32.mrb[2].mxu1  ;;  %v574_v44 = vsel %vm116_vm1, %v555_v33, 0.0 }
 0x219   :  { %v558_v28 = vpop.f32.mrb[3].mxu1  ;;  %v591_v38 = vmul.f32 %v716_v27, %v716_v27  ;;  %v595_v42 = vsel %vm116_vm1, %v590_v29, 0.0  ;;  %v579_v43 = vsel %vm116_vm1, %v716_v27, 0.0 }
 0x21a   :  { %v575_v30 = vsel %vm116_vm1, %v558_v28, 0.0  ;;  %v589_v31 = vmul.f32 %v558_v28, %v558_v28  ;;  %v592_v37 = vsel %vm116_vm1, %v588_v25, 0.0 }
 0x21b   :  { %v576_v34 = vadd.f32 %v575_v30, %v574_v44  ;;  %v597_v47 = vsel %vm116_vm1, %v591_v38, 0.0 }
 0x21c   :  { %v593_v39 = vsel %vm116_vm1, %v589_v31, 0.0 }
 0x21d   :  { %v578_v40 = vadd.f32 %v577_v35, %v576_v34  ;;  %v594_v41 = vadd.f32 %v593_v39, %v592_v37 }
 0x21f   :  { %v580_v45 = vadd.f32 %v579_v43, %v578_v40  ;;  %v596_v46 = vadd.f32 %v595_v42, %v594_v41 }
 0x221   :  { %v581_v48 = vrot.slane %v580_v45, 4  ;;  %v598_v49 = vadd.f32 %v597_v47, %v596_v46 }
 0x223   :  { %v582_v50 = vadd.f32 %v581_v48, %v580_v45  ;;  %v599_v54 = vrot.slane %v598_v49, 4 }
 0x225   :  { %v583_v57 = vrot.slane %v582_v50, 2  ;;  %v600_v58 = vadd.f32 %v599_v54, %v598_v49 }
 0x227   :  { %v584_v59 = vadd.f32 %v583_v57, %v582_v50  ;;  %v601_v60 = vrot.slane %v600_v58, 2 }
 0x229   :  { %v585_v61 = vrot.slane %v584_v59, 1  ;;  %v602_v62 = vadd.f32 %v601_v60, %v600_v58 }
 0x22b   :  { %v586_v63 = vadd.f32 %v585_v61, %v584_v59  ;;  %v603_v0 = vrot.slane %v602_v62, 1 }
 0x22d   :  { %v587_v1 = vmul.f32 0.03125, %v586_v63  ;;  %v604_v56 = vadd.f32 %v603_v0, %v602_v62 }
 0x22f   :  { %v605_v53 = vmul.f32 0.03125, %v604_v56  ;;  %v606_v52 = vmul.f32 %v587_v1, %v587_v1 }
 0x231   :  { %v607_v55 = vsub.f32 %v605_v53, %v606_v52 }
 0x233   :  { %v609_v4 = vadd.f32 1e-05, %v607_v55 }
 0x235   :  { %741 = vrsqrt.f32 %v609_v4 }
 0x23f   :  { %v742_v8 = vpop.eup %741 }
 0x240   :  { %v611_v9 = vmul.f32 %v742_v8, %v608_v7 }
 0x242   :  { %v613_v51 = vmul.f32 %v611_v9, %v587_v1  ;;  %v618_v11 = vrot.slane %v611_v9, %v893_v36 }
 0x244   :  { %v614_v12 = vsub.f32 %v612_v10, %v613_v51  ;;  %v619_v13 = vmul.f32 %v618_v11, %v555_v33  ;;  %v620_v15 = vmul.f32 %v618_v11, %v558_v28  ;;  %v621_v16 = vmul.f32 %v715_v14, %v618_v11 }
 0x245   :  { %v622_v17 = vmul.f32 %v716_v27, %v618_v11 }
 0x246   :  { %v626_v18 = vrot.slane %v614_v12, %v893_v36 }
 0x248   :  { %v627_v19 = vadd.f32 %v626_v18, %v619_v13  ;;  %v628_v20 = vadd.f32 %v626_v18, %v620_v15  ;;  %v629_v21 = vadd.f32 %v626_v18, %v621_v16  ;;  %v630_v22 = vadd.f32 %v626_v18, %v622_v17 }
 0x24a   :  { %v631_v23 = vadd.f32 %v627_v19, %v774_v2  ;;  %v632_v32 = vadd.f32 %v628_v20, %v779_v3  ;;  %v633_v24 = vadd.f32 %v629_v21, %v786_v5  ;;  %v634_v26 = vadd.f32 %v630_v22, %v791_v6 }
 0x24c   :  { %v635_v25 = vmax.f32 %v631_v23, 0.0  ;;  %v636_v29 = vmax.f32 %v632_v32, 0.0  ;;  %v637_v33 = vmax.f32 %v633_v24, 0.0  ;;  %v638_v28 = vmax.f32 %v634_v26, 0.0 }
 0x24e   :  { %639 = vst.msk [vmem:[%s977_s4] sm:$0xff] %vm116_vm1, %v635_v25  ;;  %640 = vst.msk [vmem:[%s977_s4 + $0x8] sm:$0xff] %vm116_vm1, %v636_v29 }
 0x24f   :  { %641 = vst.msk [vmem:[%s977_s4 + $0x10] sm:$0xff] %vm116_vm1, %v637_v33  ;;  %642 = vst.msk [vmem:[%s977_s4 + $0x18] sm:$0xff] %vm116_vm1, %v638_v28 }

</bundles_post_ra>
